<compile_context>
chip_gen: v7x
topology: tpu7x:2x2x1
jax: 0.10.0
libtpu: 0.0.40
codegen_flags: <defaults>
</compile_context>

<pallas_src>
import functools

import jax
import jax.numpy as jnp
import numpy as np
from jax.experimental import pallas as pl
from jax.experimental.pallas import tpu as pltpu


# ------------------------------------------------------------------ helpers --

def _cdiv(a, b):
    return -(-a // b)


def _pad_up(x, m):
    return _cdiv(x, m) * m


def _sublane_multiple(dtype):
    bits = jnp.dtype(dtype).itemsize * 8
    return max(8, 256 // bits)           # 8 (f32), 16 (bf16/f16), 32 (int8/fp8)


def _compute_dtype(dtype):
    if dtype == jnp.bfloat16:
        return jnp.bfloat16
    # TODO(synk): integer inputs with |value| > 2^24 lose precision on the f32
    # MXU path; such inputs would need a gather/repeat implementation instead.
    return jnp.float32


def _nearest_src_idx(in_size, out_size):
    # PyTorch 'nearest' (align_corners ignored): src = floor(dst * in / out)
    dst = np.arange(out_size)
    src = np.floor(dst * (in_size / float(out_size))).astype(np.int64)
    return np.clip(src, 0, in_size - 1)


def _tpu_config():
    """(vmem_limit_bytes, block_budget_bytes, n_cores) for the current chip."""
    vmem_cap = 64 * 1024 * 1024          # conservative default (v7x per-TC VMEM)
    n_cores = 0
    try:
        info = pltpu.get_tpu_info()
        cap = getattr(info, "vmem_capacity_bytes", None)
        if cap:
            vmem_cap = int(cap)
        for attr in ("num_cores", "core_count", "num_tensorcores"):
            v = getattr(info, attr, None)
            if v:
                n_cores = int(v)
                break
    except Exception:
        pass
    if n_cores <= 0:
        # v7x exposes 64 MiB VMEM per TC and has 2 TCs/chip; v5e/v6e have 1 TC.
        n_cores = 2 if vmem_cap <= 64 * 1024 * 1024 else 1
    vmem_limit = min(vmem_cap * 3 // 4, 112 * 1024 * 1024)   # ~48 MiB v7x, ~96 MiB v5e/v6e
    block_budget = vmem_limit * 4 // 5                       # headroom for pipeline scratch
    return vmem_limit, block_budget, n_cores


# ---------------------------------------------------------- selector builders --

@functools.lru_cache(maxsize=32)
def _flat_selector_np(H, W, H_out, W_out):
    # S[h*W + w, o*W_out + q] = 1 iff (src_h(o), src_w(q)) == (h, w)
    src_h = _nearest_src_idx(H, H_out)
    src_w = _nearest_src_idx(W, W_out)
    src_flat = (src_h[:, None] * W + src_w[None, :]).reshape(-1)     # (H_out*W_out,)
    S = np.zeros((H * W, H_out * W_out), dtype=np.float32)
    S[src_flat, np.arange(H_out * W_out)] = 1.0
    return S


@functools.lru_cache(maxsize=32)
def _rowpacked_selector_np(W, W_out, sf_h, g):
    # Block-diagonal (g*W, g*sf_h*W_out): per packed input row, the column-tiled
    # W selector replicates columns and (via column tiling) the sf_h row copies.
    src_w = _nearest_src_idx(W, W_out)
    r = (np.arange(W)[:, None] == src_w[None, :]).astype(np.float32)  # (W, W_out)
    r_big = np.tile(r, (1, sf_h))                                     # (W, K)
    K = sf_h * W_out
    S = np.zeros((g * W, g * K), dtype=np.float32)
    for b in range(g):
        S[b * W:(b + 1) * W, b * K:(b + 1) * K] = r_big
    return S


# ----------------------------------------------------------- block-size model --

def _pick_row_block(rows, kin, kout, in_dtype, out_dtype, avail_bytes, n_cores):
    """Largest row block whose padded, double-buffered in+out tiles fit avail_bytes."""
    sub = max(_sublane_multiple(in_dtype), _sublane_multiple(out_dtype))
    per_row = (_pad_up(kin, 128) * jnp.dtype(in_dtype).itemsize
               + _pad_up(kout, 128) * jnp.dtype(out_dtype).itemsize)
    r = max(int(avail_bytes) // (2 * per_row), 1)          # 2x: double buffering
    r = min(r, rows)
    if r < rows:
        r = max((r // sub) * sub, min(sub, rows))
    if n_cores > 1:
        if r == rows and rows >= 2 * sub:
            # single step would leave one TC idle: split into n_cores steps
            half = _pad_up(_cdiv(rows, n_cores), sub)
            if 0 < half < rows:
                r = half
        elif r < rows:
            steps = _cdiv(rows, r)
            if steps % n_cores:
                target = _cdiv(steps, n_cores) * n_cores
                r2 = _pad_up(_cdiv(rows, target), sub)
                if 0 < r2 < rows and _cdiv(rows, r2) % n_cores == 0:
                    r = r2
    return max(r, 1)


# ------------------------------------------------------------------- kernel --

def _rows_matmul_kernel(x_ref, s_ref, o_ref):
    # x_ref: (r_blk, Kin); s_ref: (Kin, Kout); o_ref: (r_blk, Kout)
    s = s_ref[...]
    y = jnp.dot(x_ref[...].astype(s.dtype), s, preferred_element_type=jnp.float32)
    o_ref[...] = y.astype(o_ref.dtype)


def _rows_selector_matmul(x2, sel, out_dtype, r_blk, vmem_limit):
    rows, kin = x2.shape
    kout = sel.shape[1]
    steps = _cdiv(rows, r_blk)
    flops = 2 * rows * kin * kout
    bytes_accessed = (rows * kin * x2.dtype.itemsize
                      + rows * kout * jnp.dtype(out_dtype).itemsize
                      + sel.size * sel.dtype.itemsize)
    return pl.pallas_call(
        _rows_matmul_kernel,
        out_shape=jax.ShapeDtypeStruct((rows, kout), out_dtype),
        grid=(steps,),
        in_specs=[
            pl.BlockSpec((r_blk, kin), lambda i: (i, 0)),
            pl.BlockSpec((kin, kout), lambda i: (0, 0)),   # grid-invariant selector
        ],
        out_specs=pl.BlockSpec((r_blk, kout), lambda i: (i, 0)),
        compiler_params=pltpu.CompilerParams(
            dimension_semantics=("parallel",),
            vmem_limit_bytes=int(vmem_limit)),
        cost_estimate=pl.CostEstimate(flops=int(flops), transcendentals=0,
                                      bytes_accessed=int(bytes_accessed)),
    )(x2, sel)


# -------------------------------------------------------------------- paths --

def _upsample_plane_flat(x, H_out, W_out, vmem_limit, budget, n_cores):
    """Whole-plane-flatten path: one (H*W, H_out*W_out) selector.  Any scale."""
    N, C, H, W = x.shape
    NC = N * C
    cdt = _compute_dtype(x.dtype)
    kin, kout = H * W, H_out * W_out
    sel_item = jnp.dtype(cdt).itemsize
    sel_bytes = 2 * _pad_up(kin, _sublane_multiple(cdt)) * _pad_up(kout, 128) * sel_item
    if sel_bytes > budget // 2:
        return None                      # selector too big for VMEM -> row path
    r_blk = _pick_row_block(NC, kin, kout, x.dtype, x.dtype,
                            budget - sel_bytes, n_cores)
    sel = jnp.asarray(_flat_selector_np(H, W, H_out, W_out), dtype=cdt)
    out2 = _rows_selector_matmul(x.reshape(NC, kin), sel, x.dtype, r_blk, vmem_limit)
    return out2.reshape(N, C, H_out, W_out)


def _upsample_row_scale(x, H_out, W_out, vmem_limit, budget, n_cores):
    """Big-plane path (integer H scale): packed-row column-tiled W selector."""
    N, C, H, W = x.shape
    assert H_out % H == 0
    sf_h = H_out // H
    NCH = N * C * H
    K = sf_h * W_out
    cdt = _compute_dtype(x.dtype)
    sel_item = jnp.dtype(cdt).itemsize
    sub = _sublane_multiple(cdt)

    # Pick a packing factor g so the input block's lane dim g*W is 128-dense.
    g = 1
    if W < 128:
        cand = int(np.lcm(W, 128) // W)
        cand_bytes = 2 * _pad_up(cand * W, sub) * _pad_up(cand * K, 128) * sel_item
        if NCH % cand == 0 and cand * W <= 1024 and cand_bytes <= budget // 2:
            g = cand
    kin, kout = g * W, g * K
    sel_bytes = 2 * _pad_up(kin, sub) * _pad_up(kout, 128) * sel_item
    rows = NCH // g
    r_blk = _pick_row_block(rows, kin, kout, x.dtype, x.dtype,
                            max(budget - sel_bytes, 1), n_cores)
    sel = jnp.asarray(_rowpacked_selector_np(W, W_out, sf_h, g), dtype=cdt)
    out2 = _rows_selector_matmul(x.reshape(rows, kin), sel, x.dtype, r_blk, vmem_limit)
    return out2.reshape(N, C, H_out, W_out)


# ------------------------------------------------------------------ wrapper --

def hw_upsample(x, size=None, scale_factor=None, mode="nearest",
                align_corners=False):
    # TODO(synk): only mode='nearest' (the module default) is implemented;
    # bilinear/bicubic would only require dense (non-0/1) selector weights.
    assert mode == "nearest", "only nearest mode implemented"
    N, C, H, W = x.shape
    if size is not None:
        H_out, W_out = (size, size) if isinstance(size, int) else tuple(size)
    else:
        assert scale_factor is not None
        sf = scale_factor
        sf_h, sf_w = (sf, sf) if not isinstance(sf, (tuple, list)) else sf
        H_out, W_out = int(H * sf_h), int(W * sf_w)

    vmem_limit, budget, n_cores = _tpu_config()

    out = _upsample_plane_flat(x, H_out, W_out, vmem_limit, budget, n_cores)
    if out is not None:
        return out

    if H_out % H != 0:
        # TODO(synk): rare fallback (huge plane + non-integer H scale): do the
        # H-axis nearest gather with plain XLA outside the kernel, then the
        # lane-dense W replication still runs in the Pallas kernel below.
        src_h = jnp.asarray(_nearest_src_idx(H, H_out))
        x = jnp.take(x, src_h, axis=2)
        H = H_out
    return _upsample_row_scale(x, H_out, W_out, vmem_limit, budget, n_cores)


# --------------------------------------------------------------------- demo --

if __name__ == "__main__":
    key = jax.random.PRNGKey(0)
    N, C, H, W = 2, 4, 16, 16
    x = jax.random.normal(key, (N, C, H, W), dtype=jnp.float32)

    # --- integer scale factor (the module's typical use) ---------------------
    scale = 2
    up2 = jax.jit(functools.partial(hw_upsample, scale_factor=scale))
    out = jax.block_until_ready(up2(x))
    idx_h = np.arange(H * scale) // scale
    idx_w = np.arange(W * scale) // scale
    ref = np.asarray(x)[:, :, idx_h][:, :, :, idx_w]
    assert out.shape == (N, C, H * scale, W * scale)
    np.testing.assert_allclose(np.asarray(out), ref, rtol=1e-6, atol=1e-6)

    # --- arbitrary output size (non-integer H/W scale) -----------------------
    H2, W2 = 24, 40
    up_sz = jax.jit(functools.partial(hw_upsample, size=(H2, W2)))
    out2 = jax.block_until_ready(up_sz(x))
    idx_h2 = np.clip(np.floor(np.arange(H2) * (H / H2)).astype(np.int64), 0, H - 1)
    idx_w2 = np.clip(np.floor(np.arange(W2) * (W / W2)).astype(np.int64), 0, W - 1)
    ref2 = np.asarray(x)[:, :, idx_h2][:, :, :, idx_w2]
    assert out2.shape == (N, C, H2, W2)
    np.testing.assert_allclose(np.asarray(out2), ref2, rtol=1e-6, atol=1e-6)

    # --- bf16 input (exercises the 16-row sublane multiple handling) ---------
    xb = x.astype(jnp.bfloat16)
    outb = jax.block_until_ready(
        jax.jit(functools.partial(hw_upsample, scale_factor=scale))(xb))
    refb = np.asarray(xb)[:, :, idx_h][:, :, :, idx_w]
    assert outb.dtype == jnp.bfloat16
    np.testing.assert_array_equal(np.asarray(outb), refb)

    print("KERNEL_OK")
</pallas_src>

<mosaic_0001>
module attributes {stable_mosaic.version = 11 : i64} {
  func.func @_rows_matmul_kernel(%arg0: i32, %arg1: memref<8x256xf32, #tpu.memory_space<vmem>>, %arg2: memref<256x1024xf32, #tpu.memory_space<vmem>>, %arg3: memref<8x1024xf32, #tpu.memory_space<vmem>>) attributes {dimension_semantics = [#tpu.dimension_semantics<parallel>], iteration_bounds = array<i64: 1>, scalar_prefetch = 0 : i64, scratch_operands = 0 : i64, tpu.core_type = #tpu.core_type<tc>, window_params = [{transform_indices = @transform_0, window_bounds = array<i64: 8, 256>}, {pipeline_mode = #tpu.pipeline_mode<synchronous>, transform_indices = @transform_1, window_bounds = array<i64: 256, 1024>}, {transform_indices = @transform_2, window_bounds = array<i64: 8, 1024>}]} {
    %c0 = arith.constant 0 : index
    %c0_0 = arith.constant 0 : index
    %0 = vector.load %arg2[%c0, %c0_0] : memref<256x1024xf32, #tpu.memory_space<vmem>>, vector<256x1024xf32>
    %c0_1 = arith.constant 0 : index
    %c0_2 = arith.constant 0 : index
    %1 = vector.load %arg1[%c0_1, %c0_2] : memref<8x256xf32, #tpu.memory_space<vmem>>, vector<8x256xf32>
    %cst = arith.constant dense<0.000000e+00> : vector<8x1024xf32>
    %2 = tpu.matmul %1, %0, %cst {dimension_numbers = #tpu.dot_dimension_numbers<[1], [0], [0], [1], [0, 0, 1, 1], [], []>} : vector<8x256xf32>, vector<256x1024xf32>, vector<8x1024xf32> -> vector<8x1024xf32>
    %c0_3 = arith.constant 0 : index
    %c0_4 = arith.constant 0 : index
    %3 = vector.load %arg3[%c0_3, %c0_4] : memref<8x1024xf32, #tpu.memory_space<vmem>>, vector<8x1024xf32>
    tpu.vector_store %arg3[%c0_3, %c0_4], %2 {strides = array<i32>} : memref<8x1024xf32, #tpu.memory_space<vmem>>, vector<8x1024xf32>,
    return
  }
  func.func @transform_0(%arg0: i32) -> (i32, i32) {
    %c0_i32 = arith.constant 0 : i32
    %c0_i32_0 = arith.constant 0 : i32
    return %arg0, %c0_i32 : i32, i32
  }
  func.func @transform_1(%arg0: i32) -> (i32, i32) {
    %c0_i32 = arith.constant 0 : i32
    %c0_i32_0 = arith.constant 0 : i32
    %c0_i32_1 = arith.constant 0 : i32
    return %c0_i32, %c0_i32_0 : i32, i32
  }
  func.func @transform_2(%arg0: i32) -> (i32, i32) {
    %c0_i32 = arith.constant 0 : i32
    %c0_i32_0 = arith.constant 0 : i32
    return %arg0, %c0_i32 : i32, i32
  }
}

</mosaic_0001>

<bundles_post_ra>
// kernel: hw_upsample.1
= control target key start
LH: loop header
LB: loop body
LE: loop exit
PB: predicated region body
PF: predicated region fallthrough
CT: control target
= control target key end

     0   :  { %7 = vsyncpa [#allocation3], 0  ;;  %s863_s9 = smov [#allocation2]   ;;  %s935_s0 = inlined_call_operand.vmem [shape: f32[8,256], index: 0, kind: input, shape index: {}]   ;;  %s936_s1 = inlined_call_operand.hbm [shape: f32[256,1024], index: 1, kind: input, shape index: {}]   ;;  %s937_s2 = inlined_call_operand.vmem [shape: f32[8,1024], index: 2, kind: output, shape index: {}]  }
   0x1   :  { %s15_s10 = sshll.u32 %s863_s9, 4  ;;  %s839_s13 = scalar_lea.hbm %s936_s1, 32768  ;;  %s16_s10 = int_to_ptr.vmem [resolvable:$true] %s15_s10 }
   0x2   :  { %p840_p0 = scmp.ne.s32.totalorder %s936_s1, %s839_s13  ;;  %p843_p1 = scmp.lt.u32.totalorder %s839_s13, %s936_s1 }
   0x4   :  { %p845_p2 = pnand %p843_p1, %p840_p0 }
   0x6   :  { %848 = shalt.err (!%p845_p2)
}
   0x7   :  { %s849_s18 = scalar_lea.vmem %s16_s10, 32768  ;;  %p854_p4 = scmp.lt.s32.totalorder %s16_s10, %s16_s10 }
   0x8   :  { %p850_p3 = scmp.ne.s32.totalorder %s16_s10, %s849_s18  ;;  %p855_p5 = scmp.lt.s32.totalorder %s849_s18, %s849_s18 }
   0xa   :  { %p856_p6 = por %p855_p5, %p854_p4 }
   0xc   :  { %p857_p7 = pnand %p856_p6, %p850_p3 }
   0xe   :  { %860 = shalt.err (!%p857_p7)
}
   0xf   :  { %s864_s19 = smov 1024   ;;  %s865_s20 = smov 64  }
  0x10   :  { %21 = dma.hbm_to_vmem [thread:$0]  %s936_s1, 32768, %s16_s10, [#allocation3], %s864_s19, %s864_s19, %s865_s20  }
  0x11   :  { %861 = dma.done.wait [#allocation3], 32768  }
  0x12   :  { %862 = vsyncadd [#allocation3], 4294934528  ;;  %v26_v0 = vld [vmem:[#allocation2 + $0x8] sm:$0xff]  ;;  %v28_v2 = vld [vmem:[#allocation2 + $0x18] sm:$0xff] }
  0x13   :  { %v34_v1 = vld [vmem:[#allocation2 + $0x48] sm:$0xff]  ;;  %v36_v4 = vld [vmem:[#allocation2 + $0x58] sm:$0xff]  ;;  %v25_v5 = vld [vmem:[#allocation2] sm:$0xff] }
  0x14   :  { %v580_v3 = vpack.c.bf16 %v34_v1, %v26_v0  ;;  %v33_v6 = vld [vmem:[#allocation2 + $0x40] sm:$0xff]  ;;  %v644_v7 = vpack.c.bf16 %v36_v4, %v28_v2  ;;  %v27_v9 = vld [vmem:[#allocation2 + $0x10] sm:$0xff]  ;;  %v42_v11 = vld [vmem:[#allocation2 + $0x88] sm:$0xff] }
  0x15   :  { %v582_v8 = vpack.c.bf16 %v33_v6, %v25_v5  ;;  %v35_v10 = vld [vmem:[#allocation2 + $0x50] sm:$0xff]  ;;  %v50_v13 = vld [vmem:[#allocation2 + $0xc8] sm:$0xff]  ;;  %v44_v14 = vld [vmem:[#allocation2 + $0x98] sm:$0xff] }
  0x16   :  { %581 = vmatprep.subr.bf16.mxu0 %v580_v3  ;;  %v646_v12 = vpack.c.bf16 %v35_v10, %v27_v9  ;;  %v52_v15 = vld [vmem:[#allocation2 + $0xd8] sm:$0xff]  ;;  %645 = vmatprep.subr.bf16.mxu1 %v644_v7  ;;  %v584_v16 = vpack.c.bf16 %v50_v13, %v42_v11  ;;  %v41_v18 = vld [vmem:[#allocation2 + $0x80] sm:$0xff]  ;;  %v43_v20 = vld [vmem:[#allocation2 + $0x90] sm:$0xff] }
  0x17   :  { %583 = vmatpush1.bf16.msra.mxu0 %v582_v8  ;;  %v648_v17 = vpack.c.bf16 %v52_v15, %v44_v14  ;;  %v49_v19 = vld [vmem:[#allocation2 + $0xc0] sm:$0xff]  ;;  %v51_v22 = vld [vmem:[#allocation2 + $0xd0] sm:$0xff]  ;;  %v58_v23 = vld [vmem:[#allocation2 + $0x108] sm:$0xff] }
  0x18   :  { %647 = vmatpush1.bf16.msra.mxu1 %v646_v12  ;;  %v586_v21 = vpack.c.bf16 %v49_v19, %v41_v18  ;;  %v66_v24 = vld [vmem:[#allocation2 + $0x148] sm:$0xff]  ;;  %585 = vmatprep.subr.bf16.mxu0 %v584_v16  ;;  %v650_v25 = vpack.c.bf16 %v51_v22, %v43_v20  ;;  %v60_v27 = vld [vmem:[#allocation2 + $0x118] sm:$0xff]  ;;  %v57_v29 = vld [vmem:[#allocation2 + $0x100] sm:$0xff] }
  0x19   :  { %649 = vmatprep.subr.bf16.mxu1 %v648_v17  ;;  %v588_v26 = vpack.c.bf16 %v66_v24, %v58_v23  ;;  %v68_v28 = vld [vmem:[#allocation2 + $0x158] sm:$0xff]  ;;  %v65_v31 = vld [vmem:[#allocation2 + $0x140] sm:$0xff]  ;;  %v59_v32 = vld [vmem:[#allocation2 + $0x110] sm:$0xff] }
  0x1a   :  { %v652_v30 = vpack.c.bf16 %v68_v28, %v60_v27  ;;  %v67_v33 = vld [vmem:[#allocation2 + $0x150] sm:$0xff]  ;;  %v590_v34 = vpack.c.bf16 %v65_v31, %v57_v29  ;;  %v74_v35 = vld [vmem:[#allocation2 + $0x188] sm:$0xff]  ;;  %v76_v37 = vld [vmem:[#allocation2 + $0x198] sm:$0xff] }
  0x1b   :  { %587 = vmatpush1.bf16.msra.mxu0 %v586_v21  ;;  %v82_v36 = vld [vmem:[#allocation2 + $0x1c8] sm:$0xff]  ;;  %v654_v38 = vpack.c.bf16 %v67_v33, %v59_v32  ;;  %v84_v40 = vld [vmem:[#allocation2 + $0x1d8] sm:$0xff]  ;;  %v73_v41 = vld [vmem:[#allocation2 + $0x180] sm:$0xff] }
  0x1c   :  { %651 = vmatpush1.bf16.msra.mxu1 %v650_v25  ;;  %589 = vmatprep.subr.bf16.mxu0 %v588_v26  ;;  %v592_v39 = vpack.c.bf16 %v82_v36, %v74_v35  ;;  %v81_v42 = vld [vmem:[#allocation2 + $0x1c0] sm:$0xff]  ;;  %v656_v43 = vpack.c.bf16 %v84_v40, %v76_v37  ;;  %v75_v44 = vld [vmem:[#allocation2 + $0x190] sm:$0xff]  ;;  %v90_v46 = vld [vmem:[#allocation2 + $0x208] sm:$0xff] }
  0x1d   :  { %653 = vmatprep.subr.bf16.mxu1 %v652_v30  ;;  %v83_v45 = vld [vmem:[#allocation2 + $0x1d0] sm:$0xff]  ;;  %v98_v47 = vld [vmem:[#allocation2 + $0x248] sm:$0xff]  ;;  %v92_v48 = vld [vmem:[#allocation2 + $0x218] sm:$0xff]  ;;  %v594_v50 = vpack.c.bf16 %v81_v42, %v73_v41 }
  0x1e   :  { %v100_v49 = vld [vmem:[#allocation2 + $0x258] sm:$0xff]  ;;  %v658_v51 = vpack.c.bf16 %v83_v45, %v75_v44  ;;  %v596_v52 = vpack.c.bf16 %v98_v47, %v90_v46  ;;  %v89_v53 = vld [vmem:[#allocation2 + $0x200] sm:$0xff]  ;;  %v91_v55 = vld [vmem:[#allocation2 + $0x210] sm:$0xff] }
  0x1f   :  { %591 = vmatpush1.bf16.msra.mxu0 %v590_v34  ;;  %v97_v54 = vld [vmem:[#allocation2 + $0x240] sm:$0xff]  ;;  %v660_v56 = vpack.c.bf16 %v100_v49, %v92_v48  ;;  %v99_v57 = vld [vmem:[#allocation2 + $0x250] sm:$0xff]  ;;  %v106_v58 = vld [vmem:[#allocation2 + $0x288] sm:$0xff] }
  0x20   :  { %655 = vmatpush1.bf16.msra.mxu1 %v654_v38  ;;  %593 = vmatprep.subr.bf16.mxu0 %v592_v39  ;;  %v114_v59 = vld [vmem:[#allocation2 + $0x2c8] sm:$0xff]  ;;  %v108_v60 = vld [vmem:[#allocation2 + $0x298] sm:$0xff]  ;;  %v598_v62 = vpack.c.bf16 %v97_v54, %v89_v53  ;;  %v662_v63 = vpack.c.bf16 %v99_v57, %v91_v55  ;;  %v105_v1 = vld [vmem:[#allocation2 + $0x280] sm:$0xff] }
  0x21   :  { %657 = vmatprep.subr.bf16.mxu1 %v656_v43  ;;  %v116_v61 = vld [vmem:[#allocation2 + $0x2d8] sm:$0xff]  ;;  %v600_v0 = vpack.c.bf16 %v114_v59, %v106_v58  ;;  %v113_v2 = vld [vmem:[#allocation2 + $0x2c0] sm:$0xff]  ;;  %v107_v3 = vld [vmem:[#allocation2 + $0x290] sm:$0xff] }
  0x22   :  { %v664_v4 = vpack.c.bf16 %v116_v61, %v108_v60  ;;  %v115_v5 = vld [vmem:[#allocation2 + $0x2d0] sm:$0xff]  ;;  %v122_v6 = vld [vmem:[#allocation2 + $0x308] sm:$0xff]  ;;  %v124_v8 = vld [vmem:[#allocation2 + $0x318] sm:$0xff]  ;;  %v602_v10 = vpack.c.bf16 %v113_v2, %v105_v1 }
  0x23   :  { %595 = vmatpush1.bf16.msra.mxu0 %v594_v50  ;;  %v130_v7 = vld [vmem:[#allocation2 + $0x348] sm:$0xff]  ;;  %v132_v9 = vld [vmem:[#allocation2 + $0x358] sm:$0xff]  ;;  %v666_v11 = vpack.c.bf16 %v115_v5, %v107_v3  ;;  %v121_v13 = vld [vmem:[#allocation2 + $0x300] sm:$0xff] }
  0x24   :  { %659 = vmatpush1.bf16.msra.mxu1 %v658_v51  ;;  %597 = vmatprep.subr.bf16.mxu0 %v596_v52  ;;  %v604_v12 = vpack.c.bf16 %v130_v7, %v122_v6  ;;  %v129_v14 = vld [vmem:[#allocation2 + $0x340] sm:$0xff]  ;;  %v123_v15 = vld [vmem:[#allocation2 + $0x310] sm:$0xff]  ;;  %v668_v16 = vpack.c.bf16 %v132_v9, %v124_v8  ;;  %v138_v18 = vld [vmem:[#allocation2 + $0x388] sm:$0xff] }
  0x25   :  { %661 = vmatprep.subr.bf16.mxu1 %v660_v56  ;;  %v131_v17 = vld [vmem:[#allocation2 + $0x350] sm:$0xff]  ;;  %v146_v19 = vld [vmem:[#allocation2 + $0x3c8] sm:$0xff]  ;;  %v140_v20 = vld [vmem:[#allocation2 + $0x398] sm:$0xff]  ;;  %v606_v22 = vpack.c.bf16 %v129_v14, %v121_v13 }
  0x26   :  { %v148_v21 = vld [vmem:[#allocation2 + $0x3d8] sm:$0xff]  ;;  %v670_v23 = vpack.c.bf16 %v131_v17, %v123_v15  ;;  %v608_v24 = vpack.c.bf16 %v146_v19, %v138_v18  ;;  %v137_v25 = vld [vmem:[#allocation2 + $0x380] sm:$0xff]  ;;  %v139_v27 = vld [vmem:[#allocation2 + $0x390] sm:$0xff] }
  0x27   :  { %599 = vmatpush1.bf16.msra.mxu0 %v598_v62  ;;  %v145_v26 = vld [vmem:[#allocation2 + $0x3c0] sm:$0xff]  ;;  %v672_v28 = vpack.c.bf16 %v148_v21, %v140_v20  ;;  %v147_v29 = vld [vmem:[#allocation2 + $0x3d0] sm:$0xff]  ;;  %v154_v30 = vld [vmem:[#allocation2 + $0x408] sm:$0xff] }
  0x28   :  { %663 = vmatpush1.bf16.msra.mxu1 %v662_v63  ;;  %601 = vmatprep.subr.bf16.mxu0 %v600_v0  ;;  %v162_v31 = vld [vmem:[#allocation2 + $0x448] sm:$0xff]  ;;  %v156_v32 = vld [vmem:[#allocation2 + $0x418] sm:$0xff]  ;;  %v610_v34 = vpack.c.bf16 %v145_v26, %v137_v25  ;;  %v674_v35 = vpack.c.bf16 %v147_v29, %v139_v27  ;;  %v153_v37 = vld [vmem:[#allocation2 + $0x400] sm:$0xff] }
  0x29   :  { %665 = vmatprep.subr.bf16.mxu1 %v664_v4  ;;  %v164_v33 = vld [vmem:[#allocation2 + $0x458] sm:$0xff]  ;;  %v612_v36 = vpack.c.bf16 %v162_v31, %v154_v30  ;;  %v161_v38 = vld [vmem:[#allocation2 + $0x440] sm:$0xff]  ;;  %v155_v39 = vld [vmem:[#allocation2 + $0x410] sm:$0xff] }
  0x2a   :  { %v676_v40 = vpack.c.bf16 %v164_v33, %v156_v32  ;;  %v163_v41 = vld [vmem:[#allocation2 + $0x450] sm:$0xff]  ;;  %v170_v42 = vld [vmem:[#allocation2 + $0x488] sm:$0xff]  ;;  %v172_v44 = vld [vmem:[#allocation2 + $0x498] sm:$0xff]  ;;  %v614_v46 = vpack.c.bf16 %v161_v38, %v153_v37 }
  0x2b   :  { %603 = vmatpush1.bf16.msra.mxu0 %v602_v10  ;;  %v178_v43 = vld [vmem:[#allocation2 + $0x4c8] sm:$0xff]  ;;  %v180_v45 = vld [vmem:[#allocation2 + $0x4d8] sm:$0xff]  ;;  %v678_v47 = vpack.c.bf16 %v163_v41, %v155_v39  ;;  %v169_v49 = vld [vmem:[#allocation2 + $0x480] sm:$0xff] }
  0x2c   :  { %667 = vmatpush1.bf16.msra.mxu1 %v666_v11  ;;  %605 = vmatprep.subr.bf16.mxu0 %v604_v12  ;;  %v616_v48 = vpack.c.bf16 %v178_v43, %v170_v42  ;;  %v177_v50 = vld [vmem:[#allocation2 + $0x4c0] sm:$0xff]  ;;  %v171_v51 = vld [vmem:[#allocation2 + $0x490] sm:$0xff]  ;;  %v680_v52 = vpack.c.bf16 %v180_v45, %v172_v44  ;;  %v186_v54 = vld [vmem:[#allocation2 + $0x508] sm:$0xff] }
  0x2d   :  { %669 = vmatprep.subr.bf16.mxu1 %v668_v16  ;;  %v179_v53 = vld [vmem:[#allocation2 + $0x4d0] sm:$0xff]  ;;  %v194_v55 = vld [vmem:[#allocation2 + $0x548] sm:$0xff]  ;;  %v188_v56 = vld [vmem:[#allocation2 + $0x518] sm:$0xff]  ;;  %v618_v58 = vpack.c.bf16 %v177_v50, %v169_v49 }
  0x2e   :  { %v196_v57 = vld [vmem:[#allocation2 + $0x558] sm:$0xff]  ;;  %v682_v59 = vpack.c.bf16 %v179_v53, %v171_v51  ;;  %v620_v60 = vpack.c.bf16 %v194_v55, %v186_v54  ;;  %v185_v61 = vld [vmem:[#allocation2 + $0x500] sm:$0xff]  ;;  %v187_v63 = vld [vmem:[#allocation2 + $0x510] sm:$0xff] }
  0x2f   :  { %607 = vmatpush1.bf16.msra.mxu0 %v606_v22  ;;  %v193_v62 = vld [vmem:[#allocation2 + $0x540] sm:$0xff]  ;;  %v684_v0 = vpack.c.bf16 %v196_v57, %v188_v56  ;;  %v195_v1 = vld [vmem:[#allocation2 + $0x550] sm:$0xff]  ;;  %v202_v2 = vld [vmem:[#allocation2 + $0x588] sm:$0xff] }
  0x30   :  { %671 = vmatpush1.bf16.msra.mxu1 %v670_v23  ;;  %609 = vmatprep.subr.bf16.mxu0 %v608_v24  ;;  %v210_v3 = vld [vmem:[#allocation2 + $0x5c8] sm:$0xff]  ;;  %v204_v4 = vld [vmem:[#allocation2 + $0x598] sm:$0xff]  ;;  %v622_v6 = vpack.c.bf16 %v193_v62, %v185_v61  ;;  %v201_v7 = vld [vmem:[#allocation2 + $0x580] sm:$0xff]  ;;  %v686_v8 = vpack.c.bf16 %v195_v1, %v187_v63 }
  0x31   :  { %673 = vmatprep.subr.bf16.mxu1 %v672_v28  ;;  %v212_v5 = vld [vmem:[#allocation2 + $0x5d8] sm:$0xff]  ;;  %v624_v9 = vpack.c.bf16 %v210_v3, %v202_v2  ;;  %v209_v10 = vld [vmem:[#allocation2 + $0x5c0] sm:$0xff]  ;;  %v203_v11 = vld [vmem:[#allocation2 + $0x590] sm:$0xff] }
  0x32   :  { %v211_v12 = vld [vmem:[#allocation2 + $0x5d0] sm:$0xff]  ;;  %v688_v13 = vpack.c.bf16 %v212_v5, %v204_v4  ;;  %v218_v14 = vld [vmem:[#allocation2 + $0x608] sm:$0xff]  ;;  %v220_v17 = vld [vmem:[#allocation2 + $0x618] sm:$0xff]  ;;  %v626_v19 = vpack.c.bf16 %v209_v10, %v201_v7 }
  0x33   :  { %611 = vmatpush1.bf16.msra.mxu0 %v610_v34  ;;  %v226_v15 = vld [vmem:[#allocation2 + $0x648] sm:$0xff]  ;;  %v228_v18 = vld [vmem:[#allocation2 + $0x658] sm:$0xff]  ;;  %v690_v20 = vpack.c.bf16 %v211_v12, %v203_v11  ;;  %v217_v22 = vld [vmem:[#allocation2 + $0x600] sm:$0xff] }
  0x34   :  { %675 = vmatpush1.bf16.msra.mxu1 %v674_v35  ;;  %613 = vmatprep.subr.bf16.mxu0 %v612_v36  ;;  %v896_v16 = vld [vmem:[%s935_s0 + $0x8] sm:$0xff]  ;;  %v628_v21 = vpack.c.bf16 %v226_v15, %v218_v14  ;;  %v225_v23 = vld [vmem:[#allocation2 + $0x640] sm:$0xff]  ;;  %v219_v24 = vld [vmem:[#allocation2 + $0x610] sm:$0xff]  ;;  %v692_v25 = vpack.c.bf16 %v228_v18, %v220_v17 }
  0x35   :  { %677 = vmatprep.subr.bf16.mxu1 %v676_v40  ;;  %347 = vmatprep.mubr.f32.mxu0 %v896_v16  ;;  %v227_v26 = vld [vmem:[#allocation2 + $0x650] sm:$0xff]  ;;  %v234_v27 = vld [vmem:[#allocation2 + $0x688] sm:$0xff]  ;;  %v236_v29 = vld [vmem:[#allocation2 + $0x698] sm:$0xff]  ;;  %v630_v31 = vpack.c.bf16 %v225_v23, %v217_v22 }
  0x36   :  { %418 = vmatprep.mubr.f32.mxu1 %v896_v16  ;;  %v242_v28 = vld [vmem:[#allocation2 + $0x6c8] sm:$0xff]  ;;  %v244_v30 = vld [vmem:[#allocation2 + $0x6d8] sm:$0xff]  ;;  %v694_v32 = vpack.c.bf16 %v227_v26, %v219_v24  ;;  %v233_v34 = vld [vmem:[#allocation2 + $0x680] sm:$0xff] }
  0x37   :  { %615 = vmatpush1.bf16.msra.mxu0 %v614_v46  ;;  %v632_v33 = vpack.c.bf16 %v242_v28, %v234_v27  ;;  %v241_v35 = vld [vmem:[#allocation2 + $0x6c0] sm:$0xff]  ;;  %v235_v36 = vld [vmem:[#allocation2 + $0x690] sm:$0xff]  ;;  %v696_v37 = vpack.c.bf16 %v244_v30, %v236_v29  ;;  %v250_v39 = vld [vmem:[#allocation2 + $0x708] sm:$0xff] }
  0x38   :  { %679 = vmatpush1.bf16.msra.mxu1 %v678_v47  ;;  %617 = vmatprep.subr.bf16.mxu0 %v616_v48  ;;  %v243_v38 = vld [vmem:[#allocation2 + $0x6d0] sm:$0xff]  ;;  %v258_v40 = vld [vmem:[#allocation2 + $0x748] sm:$0xff]  ;;  %v252_v41 = vld [vmem:[#allocation2 + $0x718] sm:$0xff]  ;;  %v634_v43 = vpack.c.bf16 %v241_v35, %v233_v34 }
  0x39   :  { %681 = vmatprep.subr.bf16.mxu1 %v680_v52  ;;  %v260_v42 = vld [vmem:[#allocation2 + $0x758] sm:$0xff]  ;;  %v698_v44 = vpack.c.bf16 %v243_v38, %v235_v36  ;;  %v636_v45 = vpack.c.bf16 %v258_v40, %v250_v39  ;;  %v249_v46 = vld [vmem:[#allocation2 + $0x700] sm:$0xff]  ;;  %v251_v48 = vld [vmem:[#allocation2 + $0x710] sm:$0xff] }
  0x3a   :  { %v257_v47 = vld [vmem:[#allocation2 + $0x740] sm:$0xff]  ;;  %v700_v49 = vpack.c.bf16 %v260_v42, %v252_v41  ;;  %v259_v50 = vld [vmem:[#allocation2 + $0x750] sm:$0xff]  ;;  %v266_v51 = vld [vmem:[#allocation2 + $0x788] sm:$0xff] }
  0x3b   :  { %619 = vmatpush1.bf16.msra.mxu0 %v618_v58  ;;  %v274_v52 = vld [vmem:[#allocation2 + $0x7c8] sm:$0xff]  ;;  %v268_v53 = vld [vmem:[#allocation2 + $0x798] sm:$0xff]  ;;  %v638_v55 = vpack.c.bf16 %v257_v47, %v249_v46  ;;  %v702_v56 = vpack.c.bf16 %v259_v50, %v251_v48  ;;  %v265_v58 = vld [vmem:[#allocation2 + $0x780] sm:$0xff] }
  0x3c   :  { %683 = vmatpush1.bf16.msra.mxu1 %v682_v59  ;;  %621 = vmatprep.subr.bf16.mxu0 %v620_v60  ;;  %v276_v54 = vld [vmem:[#allocation2 + $0x7d8] sm:$0xff]  ;;  %v640_v57 = vpack.c.bf16 %v274_v52, %v266_v51  ;;  %v273_v59 = vld [vmem:[#allocation2 + $0x7c0] sm:$0xff]  ;;  %v267_v60 = vld [vmem:[#allocation2 + $0x790] sm:$0xff] }
  0x3d   :  { %685 = vmatprep.subr.bf16.mxu1 %v684_v0  ;;  %v704_v61 = vpack.c.bf16 %v276_v54, %v268_v53  ;;  %v275_v62 = vld [vmem:[#allocation2 + $0x7d0] sm:$0xff]  ;;  %v30_v63 = vld [vmem:[#allocation2 + $0x28] sm:$0xff]  ;;  %v32_v1 = vld [vmem:[#allocation2 + $0x38] sm:$0xff]  ;;  %v642_v3 = vpack.c.bf16 %v273_v59, %v265_v58 }
  0x3e   :  { %v38_v0 = vld [vmem:[#allocation2 + $0x68] sm:$0xff]  ;;  %v40_v2 = vld [vmem:[#allocation2 + $0x78] sm:$0xff]  ;;  %v706_v4 = vpack.c.bf16 %v275_v62, %v267_v60  ;;  %v37_v7 = vld [vmem:[#allocation2 + $0x60] sm:$0xff] }
  0x3f   :  { %623 = vmatpush1.bf16.msra.mxu0 %v622_v6  ;;  %v708_v5 = vpack.c.bf16 %v38_v0, %v30_v63  ;;  %v29_v6 = vld [vmem:[#allocation2 + $0x20] sm:$0xff]  ;;  %v39_v10 = vld [vmem:[#allocation2 + $0x70] sm:$0xff]  ;;  %v46_v11 = vld [vmem:[#allocation2 + $0xa8] sm:$0xff] }
  0x40   :  { %687 = vmatpush1.bf16.msra.mxu1 %v686_v8  ;;  %625 = vmatprep.subr.bf16.mxu0 %v624_v9  ;;  %v31_v8 = vld [vmem:[#allocation2 + $0x30] sm:$0xff]  ;;  %v772_v9 = vpack.c.bf16 %v40_v2, %v32_v1  ;;  %v54_v12 = vld [vmem:[#allocation2 + $0xe8] sm:$0xff]  ;;  %v56_v14 = vld [vmem:[#allocation2 + $0xf8] sm:$0xff]  ;;  %v710_v17 = vpack.c.bf16 %v37_v7, %v29_v6 }
  0x41   :  { %689 = vmatprep.subr.bf16.mxu1 %v688_v13  ;;  %v48_v13 = vld [vmem:[#allocation2 + $0xb8] sm:$0xff]  ;;  %v903_v15 = vld [vmem:[%s935_s0] sm:$0xff]  ;;  %v774_v18 = vpack.c.bf16 %v39_v10, %v31_v8  ;;  %v47_v22 = vld [vmem:[#allocation2 + $0xb0] sm:$0xff] }
  0x42   :  { %v776_v23 = vpack.c.bf16 %v56_v14, %v48_v13  ;;  %v55_v24 = vld [vmem:[#allocation2 + $0xf0] sm:$0xff]  ;;  %v70_v26 = vld [vmem:[#allocation2 + $0x168] sm:$0xff]  ;;  %v64_v27 = vld [vmem:[#allocation2 + $0x138] sm:$0xff] }
  0x43   :  { %627 = vmatpush1.bf16.msra.mxu0 %v626_v19  ;;  %v712_v19 = vpack.c.bf16 %v54_v12, %v46_v11  ;;  %v72_v28 = vld [vmem:[#allocation2 + $0x178] sm:$0xff]  ;;  %v778_v30 = vpack.c.bf16 %v55_v24, %v47_v22  ;;  %v63_v34 = vld [vmem:[#allocation2 + $0x130] sm:$0xff]  ;;  %v86_v38 = vld [vmem:[#allocation2 + $0x1e8] sm:$0xff] }
  0x44   :  { %691 = vmatpush1.bf16.msra.mxu1 %v690_v20  ;;  %629 = vmatprep.subr.bf16.mxu0 %v628_v21  ;;  %v45_v20 = vld [vmem:[#allocation2 + $0xa0] sm:$0xff]  ;;  %v780_v35 = vpack.c.bf16 %v72_v28, %v64_v27  ;;  %v71_v36 = vld [vmem:[#allocation2 + $0x170] sm:$0xff]  ;;  %v80_v39 = vld [vmem:[#allocation2 + $0x1b8] sm:$0xff] }
  0x45   :  { %693 = vmatprep.subr.bf16.mxu1 %v692_v25  ;;  %v53_v21 = vld [vmem:[#allocation2 + $0xe0] sm:$0xff]  ;;  %v62_v25 = vld [vmem:[#allocation2 + $0x128] sm:$0xff]  ;;  %v88_v40 = vld [vmem:[#allocation2 + $0x1f8] sm:$0xff]  ;;  %v782_v42 = vpack.c.bf16 %v71_v36, %v63_v34 }
  0x46   :  { %v714_v29 = vpack.c.bf16 %v53_v21, %v45_v20  ;;  %v79_v46 = vld [vmem:[#allocation2 + $0x1b0] sm:$0xff]  ;;  %v784_v47 = vpack.c.bf16 %v88_v40, %v80_v39  ;;  %v102_v50 = vld [vmem:[#allocation2 + $0x268] sm:$0xff]  ;;  %v96_v51 = vld [vmem:[#allocation2 + $0x238] sm:$0xff] }
  0x47   :  { %631 = vmatpush1.bf16.msra.mxu0 %v630_v31  ;;  %v716_v31 = vpack.c.bf16 %v70_v26, %v62_v25  ;;  %v87_v48 = vld [vmem:[#allocation2 + $0x1f0] sm:$0xff]  ;;  %v104_v52 = vld [vmem:[#allocation2 + $0x278] sm:$0xff]  ;;  %v110_v60 = vld [vmem:[#allocation2 + $0x2a8] sm:$0xff] }
  0x48   :  { %695 = vmatpush1.bf16.msra.mxu1 %v694_v32  ;;  %633 = vmatprep.subr.bf16.mxu0 %v632_v33  ;;  %v61_v32 = vld [vmem:[#allocation2 + $0x120] sm:$0xff]  ;;  %v788_v58 = vpack.c.bf16 %v104_v52, %v96_v51  ;;  %v103_v59 = vld [vmem:[#allocation2 + $0x270] sm:$0xff]  ;;  %v112_v62 = vld [vmem:[#allocation2 + $0x2b8] sm:$0xff] }
  0x49   :  { %697 = vmatprep.subr.bf16.mxu1 %v696_v37  ;;  %v69_v33 = vld [vmem:[#allocation2 + $0x160] sm:$0xff]  ;;  %v78_v37 = vld [vmem:[#allocation2 + $0x1a8] sm:$0xff]  ;;  %v120_v63 = vld [vmem:[#allocation2 + $0x2f8] sm:$0xff] }
  0x4a   :  { %v718_v41 = vpack.c.bf16 %v69_v33, %v61_v32  ;;  %v792_v6 = vpack.c.bf16 %v120_v63, %v112_v62  ;;  %v119_v7 = vld [vmem:[#allocation2 + $0x2f0] sm:$0xff]  ;;  %v126_v8 = vld [vmem:[#allocation2 + $0x328] sm:$0xff]  ;;  %v128_v10 = vld [vmem:[#allocation2 + $0x338] sm:$0xff] }
  0x4b   :  { %635 = vmatpush1.bf16.msra.mxu0 %v634_v43  ;;  %v720_v43 = vpack.c.bf16 %v86_v38, %v78_v37  ;;  %v136_v11 = vld [vmem:[#allocation2 + $0x378] sm:$0xff]  ;;  %v135_v21 = vld [vmem:[#allocation2 + $0x370] sm:$0xff]  ;;  %v142_v22 = vld [vmem:[#allocation2 + $0x3a8] sm:$0xff] }
  0x4c   :  { %699 = vmatpush1.bf16.msra.mxu1 %v698_v44  ;;  %637 = vmatprep.subr.bf16.mxu0 %v636_v45  ;;  %v77_v44 = vld [vmem:[#allocation2 + $0x1a0] sm:$0xff]  ;;  %v796_v20 = vpack.c.bf16 %v136_v11, %v128_v10  ;;  %v144_v24 = vld [vmem:[#allocation2 + $0x3b8] sm:$0xff]  ;;  %v151_v33 = vld [vmem:[#allocation2 + $0x3f0] sm:$0xff] }
  0x4d   :  { %701 = vmatprep.subr.bf16.mxu1 %v700_v49  ;;  %v85_v45 = vld [vmem:[#allocation2 + $0x1e0] sm:$0xff]  ;;  %v94_v49 = vld [vmem:[#allocation2 + $0x228] sm:$0xff]  ;;  %v152_v25 = vld [vmem:[#allocation2 + $0x3f8] sm:$0xff] }
  0x4e   :  { %v722_v53 = vpack.c.bf16 %v85_v45, %v77_v44  ;;  %v724_v54 = vpack.c.bf16 %v102_v50, %v94_v49  ;;  %v800_v32 = vpack.c.bf16 %v152_v25, %v144_v24  ;;  %v158_v34 = vld [vmem:[#allocation2 + $0x428] sm:$0xff]  ;;  %v160_v36 = vld [vmem:[#allocation2 + $0x438] sm:$0xff]  ;;  %v167_v45 = vld [vmem:[#allocation2 + $0x470] sm:$0xff] }
  0x4f   :  { %639 = vmatpush1.bf16.msra.mxu0 %v638_v55  ;;  %v93_v55 = vld [vmem:[#allocation2 + $0x220] sm:$0xff]  ;;  %v168_v37 = vld [vmem:[#allocation2 + $0x478] sm:$0xff] }
  0x50   :  { %703 = vmatpush1.bf16.msra.mxu1 %v702_v56  ;;  %641 = vmatprep.subr.bf16.mxu0 %v640_v57  ;;  %v101_v56 = vld [vmem:[#allocation2 + $0x260] sm:$0xff]  ;;  %v95_v57 = vld [vmem:[#allocation2 + $0x230] sm:$0xff]  ;;  %v804_v44 = vpack.c.bf16 %v168_v37, %v160_v36  ;;  %v184_v49 = vld [vmem:[#allocation2 + $0x4f8] sm:$0xff] }
  0x51   :  { %705 = vmatprep.subr.bf16.mxu1 %v704_v61  ;;  %v118_v61 = vld [vmem:[#allocation2 + $0x2e8] sm:$0xff]  ;;  %v726_v0 = vpack.c.bf16 %v101_v56, %v93_v55  ;;  %v790_v1 = vpack.c.bf16 %v103_v59, %v95_v57  ;;  %v183_v56 = vld [vmem:[#allocation2 + $0x4f0] sm:$0xff]  ;;  %v192_v59 = vld [vmem:[#allocation2 + $0x538] sm:$0xff] }
  0x52   :  { %v728_v2 = vpack.c.bf16 %v118_v61, %v110_v60  ;;  %v190_v57 = vld [vmem:[#allocation2 + $0x528] sm:$0xff]  ;;  %v200_v60 = vld [vmem:[#allocation2 + $0x578] sm:$0xff] }
  0x53   :  { %643 = vmatpush1.bf16.msra.mxu0 %v642_v3  ;;  %v109_v3 = vld [vmem:[#allocation2 + $0x2a0] sm:$0xff] }
  0x54   :  { %707 = vmatpush1.bf16.msra.mxu1 %v706_v4  ;;  %709 = vmatprep.subr.bf16.mxu0 %v708_v5  ;;  %v117_v4 = vld [vmem:[#allocation2 + $0x2e0] sm:$0xff]  ;;  %v111_v5 = vld [vmem:[#allocation2 + $0x2b0] sm:$0xff] }
  0x55   :  { %773 = vmatprep.subr.bf16.mxu1 %v772_v9  ;;  %v134_v9 = vld [vmem:[#allocation2 + $0x368] sm:$0xff]  ;;  %v730_v12 = vpack.c.bf16 %v117_v4, %v109_v3  ;;  %v794_v13 = vpack.c.bf16 %v119_v7, %v111_v5  ;;  %v812_v3 = vpack.c.bf16 %v200_v60, %v192_v59  ;;  %v199_v4 = vld [vmem:[#allocation2 + $0x570] sm:$0xff]  ;;  %v208_v7 = vld [vmem:[#allocation2 + $0x5b8] sm:$0xff] }
  0x56   :  { %348 = vmatmul.mubr.f32.vlgmr.msra.gmra.mrb[0].mxu0 %v903_v15  ;;  %v732_v14 = vpack.c.bf16 %v134_v9, %v126_v8  ;;  %v206_v5 = vld [vmem:[#allocation2 + $0x5a8] sm:$0xff]  ;;  %v216_v8 = vld [vmem:[#allocation2 + $0x5f8] sm:$0xff] }
  0x57   :  { %419 = vmatmul.mubr.f32.vlgmr.msra.gmra.mrb[0].mxu1 %v903_v15  ;;  %711 = vmatpush1.bf16.msra.mxu0 %v710_v17  ;;  %v125_v17 = vld [vmem:[#allocation2 + $0x320] sm:$0xff] }
  0x58   :  { %775 = vmatpush1.bf16.msra.mxu1 %v774_v18  ;;  %713 = vmatprep.subr.bf16.mxu0 %v712_v19  ;;  %v133_v18 = vld [vmem:[#allocation2 + $0x360] sm:$0xff]  ;;  %v127_v19 = vld [vmem:[#allocation2 + $0x330] sm:$0xff] }
  0x59   :  { %777 = vmatprep.subr.bf16.mxu1 %v776_v23  ;;  %489 = vmatprep.mubr.f32.mxu0 %v896_v16  ;;  %v150_v23 = vld [vmem:[#allocation2 + $0x3e8] sm:$0xff]  ;;  %v734_v26 = vpack.c.bf16 %v133_v18, %v125_v17  ;;  %v798_v27 = vpack.c.bf16 %v135_v21, %v127_v19  ;;  %v816_v17 = vpack.c.bf16 %v216_v8, %v208_v7  ;;  %v215_v18 = vld [vmem:[#allocation2 + $0x5f0] sm:$0xff]  ;;  %v224_v21 = vld [vmem:[#allocation2 + $0x638] sm:$0xff] }
  0x5a   :  { %560 = vmatprep.mubr.f32.mxu1 %v896_v16  ;;  %v786_v16 = vpack.c.bf16 %v87_v48, %v79_v46  ;;  %v736_v28 = vpack.c.bf16 %v150_v23, %v142_v22  ;;  %v174_v46 = vld [vmem:[#allocation2 + $0x4a8] sm:$0xff]  ;;  %v176_v48 = vld [vmem:[#allocation2 + $0x4b8] sm:$0xff] }
  0x5b   :  { %715 = vmatpush1.bf16.msra.mxu0 %v714_v29  ;;  %v141_v29 = vld [vmem:[#allocation2 + $0x3a0] sm:$0xff]  ;;  %v808_v55 = vpack.c.bf16 %v184_v49, %v176_v48  ;;  %v222_v19 = vld [vmem:[#allocation2 + $0x628] sm:$0xff]  ;;  %v232_v22 = vld [vmem:[#allocation2 + $0x678] sm:$0xff] }
  0x5c   :  { %779 = vmatpush1.bf16.msra.mxu1 %v778_v30  ;;  %717 = vmatprep.subr.bf16.mxu0 %v716_v31  ;;  %v149_v30 = vld [vmem:[#allocation2 + $0x3e0] sm:$0xff]  ;;  %v143_v31 = vld [vmem:[#allocation2 + $0x3b0] sm:$0xff] }
  0x5d   :  { %781 = vmatprep.subr.bf16.mxu1 %v780_v35  ;;  %v166_v35 = vld [vmem:[#allocation2 + $0x468] sm:$0xff]  ;;  %v738_v38 = vpack.c.bf16 %v149_v30, %v141_v29  ;;  %v802_v39 = vpack.c.bf16 %v151_v33, %v143_v31  ;;  %v820_v29 = vpack.c.bf16 %v232_v22, %v224_v21  ;;  %v231_v30 = vld [vmem:[#allocation2 + $0x670] sm:$0xff]  ;;  %v240_v33 = vld [vmem:[#allocation2 + $0x6b8] sm:$0xff] }
  0x5e   :  { %v740_v40 = vpack.c.bf16 %v166_v35, %v158_v34  ;;  %v238_v31 = vld [vmem:[#allocation2 + $0x6a8] sm:$0xff]  ;;  %v248_v34 = vld [vmem:[#allocation2 + $0x6f8] sm:$0xff] }
  0x5f   :  { %719 = vmatpush1.bf16.msra.mxu0 %v718_v41  ;;  %v157_v41 = vld [vmem:[#allocation2 + $0x420] sm:$0xff] }
  0x60   :  { %783 = vmatpush1.bf16.msra.mxu1 %v782_v42  ;;  %721 = vmatprep.subr.bf16.mxu0 %v720_v43  ;;  %v165_v42 = vld [vmem:[#allocation2 + $0x460] sm:$0xff]  ;;  %v159_v43 = vld [vmem:[#allocation2 + $0x430] sm:$0xff] }
  0x61   :  { %785 = vmatprep.subr.bf16.mxu1 %v784_v47  ;;  %v182_v47 = vld [vmem:[#allocation2 + $0x4e8] sm:$0xff]  ;;  %v742_v50 = vpack.c.bf16 %v165_v42, %v157_v41  ;;  %v806_v51 = vpack.c.bf16 %v167_v45, %v159_v43  ;;  %v824_v41 = vpack.c.bf16 %v248_v34, %v240_v33  ;;  %v247_v42 = vld [vmem:[#allocation2 + $0x6f0] sm:$0xff]  ;;  %v256_v45 = vld [vmem:[#allocation2 + $0x738] sm:$0xff] }
  0x62   :  { %v744_v52 = vpack.c.bf16 %v182_v47, %v174_v46  ;;  %v254_v43 = vld [vmem:[#allocation2 + $0x728] sm:$0xff]  ;;  %v264_v46 = vld [vmem:[#allocation2 + $0x778] sm:$0xff] }
  0x63   :  { %723 = vmatpush1.bf16.msra.mxu0 %v722_v53  ;;  %v173_v53 = vld [vmem:[#allocation2 + $0x4a0] sm:$0xff] }
  0x64   :  { %787 = vmatpush1.bf16.msra.mxu1 %v786_v16  ;;  %725 = vmatprep.subr.bf16.mxu0 %v724_v54  ;;  %v181_v16 = vld [vmem:[#allocation2 + $0x4e0] sm:$0xff]  ;;  %v175_v54 = vld [vmem:[#allocation2 + $0x4b0] sm:$0xff] }
  0x65   :  { %789 = vmatprep.subr.bf16.mxu1 %v788_v58  ;;  %v198_v58 = vld [vmem:[#allocation2 + $0x568] sm:$0xff]  ;;  %v746_v61 = vpack.c.bf16 %v181_v16, %v173_v53  ;;  %v810_v62 = vpack.c.bf16 %v183_v56, %v175_v54  ;;  %v828_v53 = vpack.c.bf16 %v264_v46, %v256_v45  ;;  %v263_v16 = vld [vmem:[#allocation2 + $0x770] sm:$0xff]  ;;  %v272_v56 = vld [vmem:[#allocation2 + $0x7b8] sm:$0xff] }
  0x66   :  { %v748_v63 = vpack.c.bf16 %v198_v58, %v190_v57  ;;  %v270_v54 = vld [vmem:[#allocation2 + $0x7a8] sm:$0xff]  ;;  %v280_v57 = vld [vmem:[#allocation2 + $0x7f8] sm:$0xff] }
  0x67   :  { %727 = vmatpush1.bf16.msra.mxu0 %v726_v0  ;;  %v189_v0 = vld [vmem:[#allocation2 + $0x520] sm:$0xff] }
  0x68   :  { %791 = vmatpush1.bf16.msra.mxu1 %v790_v1  ;;  %729 = vmatprep.subr.bf16.mxu0 %v728_v2  ;;  %v197_v1 = vld [vmem:[#allocation2 + $0x560] sm:$0xff]  ;;  %v191_v2 = vld [vmem:[#allocation2 + $0x530] sm:$0xff] }
  0x69   :  { %793 = vmatprep.subr.bf16.mxu1 %v792_v6  ;;  %v214_v6 = vld [vmem:[#allocation2 + $0x5e8] sm:$0xff]  ;;  %v750_v9 = vpack.c.bf16 %v197_v1, %v189_v0  ;;  %v814_v10 = vpack.c.bf16 %v199_v4, %v191_v2  ;;  %v271_v0 = vld [vmem:[#allocation2 + $0x7b0] sm:$0xff] }
  0x6a   :  { %v752_v11 = vpack.c.bf16 %v214_v6, %v206_v5  ;;  %v279_v1 = vld [vmem:[#allocation2 + $0x7f0] sm:$0xff] }
  0x6b   :  { %731 = vmatpush1.bf16.msra.mxu0 %v730_v12  ;;  %v205_v12 = vld [vmem:[#allocation2 + $0x5a0] sm:$0xff] }
  0x6c   :  { %795 = vmatpush1.bf16.msra.mxu1 %v794_v13  ;;  %733 = vmatprep.subr.bf16.mxu0 %v732_v14  ;;  %v213_v13 = vld [vmem:[#allocation2 + $0x5e0] sm:$0xff]  ;;  %v207_v14 = vld [vmem:[#allocation2 + $0x5b0] sm:$0xff] }
  0x6d   :  { %797 = vmatprep.subr.bf16.mxu1 %v796_v20  ;;  %v230_v20 = vld [vmem:[#allocation2 + $0x668] sm:$0xff]  ;;  %v754_v23 = vpack.c.bf16 %v213_v13, %v205_v12  ;;  %v818_v24 = vpack.c.bf16 %v215_v18, %v207_v14 }
  0x6e   :  { %v756_v25 = vpack.c.bf16 %v230_v20, %v222_v19 }
  0x6f   :  { %735 = vmatpush1.bf16.msra.mxu0 %v734_v26  ;;  %v221_v26 = vld [vmem:[#allocation2 + $0x620] sm:$0xff] }
  0x70   :  { %799 = vmatpush1.bf16.msra.mxu1 %v798_v27  ;;  %737 = vmatprep.subr.bf16.mxu0 %v736_v28  ;;  %v229_v27 = vld [vmem:[#allocation2 + $0x660] sm:$0xff]  ;;  %v223_v28 = vld [vmem:[#allocation2 + $0x630] sm:$0xff] }
  0x71   :  { %801 = vmatprep.subr.bf16.mxu1 %v800_v32  ;;  %v246_v32 = vld [vmem:[#allocation2 + $0x6e8] sm:$0xff]  ;;  %v758_v35 = vpack.c.bf16 %v229_v27, %v221_v26  ;;  %v822_v36 = vpack.c.bf16 %v231_v30, %v223_v28 }
  0x72   :  { %v760_v37 = vpack.c.bf16 %v246_v32, %v238_v31 }
  0x73   :  { %739 = vmatpush1.bf16.msra.mxu0 %v738_v38  ;;  %v237_v38 = vld [vmem:[#allocation2 + $0x6a0] sm:$0xff] }
  0x74   :  { %803 = vmatpush1.bf16.msra.mxu1 %v802_v39  ;;  %741 = vmatprep.subr.bf16.mxu0 %v740_v40  ;;  %v245_v39 = vld [vmem:[#allocation2 + $0x6e0] sm:$0xff]  ;;  %v239_v40 = vld [vmem:[#allocation2 + $0x6b0] sm:$0xff] }
  0x75   :  { %805 = vmatprep.subr.bf16.mxu1 %v804_v44  ;;  %v262_v44 = vld [vmem:[#allocation2 + $0x768] sm:$0xff]  ;;  %v762_v47 = vpack.c.bf16 %v245_v39, %v237_v38  ;;  %v826_v48 = vpack.c.bf16 %v247_v42, %v239_v40 }
  0x76   :  { %v764_v49 = vpack.c.bf16 %v262_v44, %v254_v43 }
  0x77   :  { %743 = vmatpush1.bf16.msra.mxu0 %v742_v50  ;;  %v253_v50 = vld [vmem:[#allocation2 + $0x720] sm:$0xff] }
  0x78   :  { %807 = vmatpush1.bf16.msra.mxu1 %v806_v51  ;;  %745 = vmatprep.subr.bf16.mxu0 %v744_v52  ;;  %v261_v51 = vld [vmem:[#allocation2 + $0x760] sm:$0xff]  ;;  %v255_v52 = vld [vmem:[#allocation2 + $0x730] sm:$0xff] }
  0x79   :  { %809 = vmatprep.subr.bf16.mxu1 %v808_v55  ;;  %v278_v55 = vld [vmem:[#allocation2 + $0x7e8] sm:$0xff]  ;;  %v766_v58 = vpack.c.bf16 %v261_v51, %v253_v50  ;;  %v830_v59 = vpack.c.bf16 %v263_v16, %v255_v52 }
  0x7a   :  { %v768_v60 = vpack.c.bf16 %v278_v55, %v270_v54 }
  0x7b   :  { %747 = vmatpush1.bf16.msra.mxu0 %v746_v61  ;;  %v269_v61 = vld [vmem:[#allocation2 + $0x7a0] sm:$0xff] }
  0x7c   :  { %811 = vmatpush1.bf16.msra.mxu1 %v810_v62  ;;  %749 = vmatprep.subr.bf16.mxu0 %v748_v63  ;;  %v277_v62 = vld [vmem:[#allocation2 + $0x7e0] sm:$0xff]  ;;  %v832_v63 = vpack.c.bf16 %v280_v57, %v272_v56 }
  0x7d   :  { %813 = vmatprep.subr.bf16.mxu1 %v812_v3  ;;  %v770_v2 = vpack.c.bf16 %v277_v62, %v269_v61  ;;  %v834_v3 = vpack.c.bf16 %v279_v1, %v271_v0 }
  0x7f   :  { %751 = vmatpush1.bf16.msra.mxu0 %v750_v9 }
  0x80   :  { %815 = vmatpush1.bf16.msra.mxu1 %v814_v10  ;;  %753 = vmatprep.subr.bf16.mxu0 %v752_v11 }
  0x81   :  { %817 = vmatprep.subr.bf16.mxu1 %v816_v17 }
  0x83   :  { %755 = vmatpush1.bf16.msra.mxu0 %v754_v23 }
  0x84   :  { %819 = vmatpush1.bf16.msra.mxu1 %v818_v24  ;;  %757 = vmatprep.subr.bf16.mxu0 %v756_v25 }
  0x85   :  { %821 = vmatprep.subr.bf16.mxu1 %v820_v29 }
  0x87   :  { %759 = vmatpush1.bf16.msra.mxu0 %v758_v35 }
  0x88   :  { %823 = vmatpush1.bf16.msra.mxu1 %v822_v36  ;;  %761 = vmatprep.subr.bf16.mxu0 %v760_v37 }
  0x89   :  { %825 = vmatprep.subr.bf16.mxu1 %v824_v41 }
  0x8b   :  { %763 = vmatpush1.bf16.msra.mxu0 %v762_v47 }
  0x8c   :  { %827 = vmatpush1.bf16.msra.mxu1 %v826_v48  ;;  %765 = vmatprep.subr.bf16.mxu0 %v764_v49 }
  0x8d   :  { %829 = vmatprep.subr.bf16.mxu1 %v828_v53 }
  0x8f   :  { %767 = vmatpush1.bf16.msra.mxu0 %v766_v58 }
  0x90   :  { %831 = vmatpush1.bf16.msra.mxu1 %v830_v59  ;;  %769 = vmatprep.subr.bf16.mxu0 %v768_v60 }
  0x91   :  { %833 = vmatprep.subr.bf16.mxu1 %v832_v63 }
  0x93   :  { %771 = vmatpush1.bf16.msra.mxu0 %v770_v2 }
  0x94   :  { %835 = vmatpush1.bf16.msra.mxu1 %v834_v3 }
  0x96   :  { %490 = vmatmul.mubr.f32.vlgmr.msra.gmra.mrb[2].mxu0 %v903_v15 }
  0x97   :  { %561 = vmatmul.mubr.f32.vlgmr.msra.gmra.mrb[2].mxu1 %v903_v15 }
 0x129   :  { %v349_v4 = vpop.f32.mrb[0].mxu0 }
 0x12a   :  { %567 = vst [vmem:[%s937_s2] sm:$0xff] %v349_v4  ;;  %v420_v5 = vpop.f32.mrb[0].mxu1  ;;  %v351_v6 = vpop.f32.mrb[1].mxu0 }
 0x12b   :  { %569 = vst [vmem:[%s937_s2 + $0x10] sm:$0xff] %v420_v5  ;;  %568 = vst [vmem:[%s937_s2 + $0x8] sm:$0xff] %v351_v6  ;;  %v422_v7 = vpop.f32.mrb[1].mxu1 }
 0x12c   :  { %570 = vst [vmem:[%s937_s2 + $0x18] sm:$0xff] %v422_v7 }
 0x169   :  { %v491_v15 = vpop.f32.mrb[2].mxu0 }
 0x16a   :  { %571 = vst [vmem:[%s937_s2 + $0x20] sm:$0xff] %v491_v15  ;;  %v562_v8 = vpop.f32.mrb[2].mxu1  ;;  %v493_v9 = vpop.f32.mrb[3].mxu0 }
 0x16b   :  { %573 = vst [vmem:[%s937_s2 + $0x30] sm:$0xff] %v562_v8  ;;  %572 = vst [vmem:[%s937_s2 + $0x28] sm:$0xff] %v493_v9  ;;  %v564_v10 = vpop.f32.mrb[3].mxu1 }
 0x16c   :  { %574 = vst [vmem:[%s937_s2 + $0x38] sm:$0xff] %v564_v10 }
 0x16d   :  { %579 = vsyncpa [#allocation3], 1 }

</bundles_post_ra>
